<compile_context>
chip_gen: v7x
topology: tpu7x:2x2x1
jax: 0.10.0
libtpu: 0.0.40
codegen_flags: <defaults>
</compile_context>

<pallas_src>
import functools

import jax
import jax.numpy as jnp
from jax.experimental import pallas as pl
from jax.experimental.pallas import tpu as pltpu

_BN_EPS = 1e-5


# --------------------------------- kernel ------------------------------------

def _preact_block_kernel(x_ref, k1_ref, k2_ref,
                         g1_ref, beta1_ref, g2_ref, beta2_ref, bias2_ref,
                         o_ref, *, channels, height):
    rows, lanes = x_ref.shape             # rows = N*H, lanes = W*C
    width = lanes // channels
    inv_npix = 1.0 / float(rows * width)  # 1 / (N*H*W)
    mm_dtype = k1_ref.dtype               # matmul operand dtype (bf16 or f32)

    # Image-boundary masks for the kh = 0 / 2 taps.  Batch images are stacked
    # along the row axis, so the rolled rows that cross an image boundary (or
    # wrap around the whole stack) must be zeroed -- exactly the rows where the
    # in-image row index is 0 (top) / height-1 (bottom).
    hh = jax.lax.broadcasted_iota(jnp.int32, (rows, lanes), 0) % height
    not_top = hh > 0
    not_bot = hh < (height - 1)

    def channel_allsum(v):
        # v: (k, lanes) with lane index = w*C + c.  Sum the W lane-groups that
        # belong to the same channel and leave the per-channel total broadcast
        # on every lane.  Cyclic recursive doubling on the XLU; exact f32, no
        # MXU.  Requires W = lanes // channels to be a power of two.
        total, step = v, channels
        while step < lanes:
            total = total + pltpu.roll(total, step, axis=1)
            step *= 2
        return total

    def bn_relu(a, gamma_l, beta_l):
        # Training-mode BatchNorm2d (biased batch variance) fused with ReLU.
        # Single stats pass: sum and sum-of-squares reduced together, then one
        # shared roll all-reduce; var = E[x^2] - mean^2.
        s1 = jnp.sum(a, axis=0, keepdims=True)
        s2 = jnp.sum(a * a, axis=0, keepdims=True)
        tot = channel_allsum(jnp.concatenate([s1, s2], axis=0)) * inv_npix
        mean = tot[0:1, :]
        var = tot[1:2, :] - mean * mean
        y = (a - mean) * jax.lax.rsqrt(var + _BN_EPS) * gamma_l + beta_l
        return jnp.maximum(y, 0.0)

    def conv3x3(a, k_ref):
        # 3x3 "same" conv: XLU row-rolls (+ boundary masks) for the kh taps,
        # then ONE MXU matmul with contraction dim 3*lanes against the
        # pre-packed block-banded weight (kw taps + channel mixing + W-edge
        # zero padding).  bf16/f32 operands, f32 accumulation.
        up = jnp.where(not_top, pltpu.roll(a, 1, axis=0), 0.0)          # a[r-1]
        dn = jnp.where(not_bot, pltpu.roll(a, rows - 1, axis=0), 0.0)   # a[r+1]
        a_cat = jnp.concatenate([up, a, dn], axis=1).astype(mm_dtype)
        return jnp.dot(a_cat, k_ref[...], preferred_element_type=jnp.float32)

    a1 = bn_relu(x_ref[...], g1_ref[...], beta1_ref[...])
    # conv1 bias dropped: exactly cancelled by bn2's batch-mean subtraction.
    y1 = conv3x3(a1, k1_ref)
    a2 = bn_relu(y1, g2_ref[...], beta2_ref[...])
    y2 = conv3x3(a2, k2_ref) + bias2_ref[...]
    o_ref[...] = y2 + x_ref[...]           # residual re-read late from VMEM


def _full_spec(shape):
    zeros = (0,) * len(shape)
    return pl.BlockSpec(shape, lambda i: zeros)


# ----------------------------- parameter packing ------------------------------

def pack_preact_params(params, *, width, matmul_dtype=jnp.bfloat16):
    """One-time repack of PyTorch-layout params into the kernel's layout."""
    c = params["bn1_gamma"].shape[0]
    lanes = width * c
    assert width & (width - 1) == 0, "channel all-reduce needs power-of-two W"

    def banded_weight(w_oihw):
        # (Cout, Cin, 3, 3) -> (3*W*Cin, W*Cout): the three per-kh block-banded
        # lane-mixing matrices stacked along the contraction axis.  Band
        # offsets realize the kw taps and the zero padding at the W edges.
        wt = jnp.transpose(w_oihw, (2, 3, 1, 0)).astype(jnp.float32)  # kh,kw,ci,co
        mats = []
        for kh in range(3):
            m = jnp.zeros((lanes, lanes), jnp.float32)
            for kw in range(3):
                band = jnp.eye(width, k=1 - kw, dtype=jnp.float32)  # w_in=w_out+kw-1
                m = m + jnp.kron(band, wt[kh, kw])
            mats.append(m)
        return jnp.concatenate(mats, axis=0).astype(matmul_dtype)    # (3L, L)

    lane_vec = lambda v: jnp.tile(v.astype(jnp.float32), width).reshape(1, lanes)

    return {
        "K1": banded_weight(params["conv1_w"]),
        "K2": banded_weight(params["conv2_w"]),
        # conv1_b deliberately not packed (cancelled by bn2 batch statistics).
        "conv2_bias_l": lane_vec(params["conv2_b"]),
        "bn1_gamma_l": lane_vec(params["bn1_gamma"]),
        "bn1_beta_l": lane_vec(params["bn1_beta"]),
        "bn2_gamma_l": lane_vec(params["bn2_gamma"]),
        "bn2_beta_l": lane_vec(params["bn2_beta"]),
    }


# --------------------------------- forward ------------------------------------

@jax.jit
def preact_block_forward(packed, x_nchw):
    n, c, h, w = x_nchw.shape
    assert w & (w - 1) == 0, "channel all-reduce needs power-of-two W"
    rows, lanes = n * h, w * c
    # Boundary-only layout change: NCHW -> (N*H, W*C), lane-dense.
    # TODO(synk): for production, keep activations in this layout between
    # blocks instead of paying two extra HBM round-trips per call.
    x2d = jnp.transpose(x_nchw, (0, 2, 3, 1)).reshape(rows, lanes)
    x2d = x2d.astype(jnp.float32)

    kernel = functools.partial(_preact_block_kernel, channels=c, height=h)
    out2d = pl.pallas_call(
        kernel,
        out_shape=jax.ShapeDtypeStruct((rows, lanes), jnp.float32),
        grid=(1,),
        in_specs=[
            _full_spec((rows, lanes)),
            _full_spec(packed["K1"].shape),
            _full_spec(packed["K2"].shape),
            _full_spec((1, lanes)),
            _full_spec((1, lanes)),
            _full_spec((1, lanes)),
            _full_spec((1, lanes)),
            _full_spec((1, lanes)),
        ],
        out_specs=_full_spec((rows, lanes)),
        compiler_params=pltpu.CompilerParams(
            dimension_semantics=("arbitrary",)),
    )(x2d, packed["K1"], packed["K2"],
      packed["bn1_gamma_l"], packed["bn1_beta_l"],
      packed["bn2_gamma_l"], packed["bn2_beta_l"],
      packed["conv2_bias_l"])

    return out2d.reshape(n, h, w, c).transpose(0, 3, 1, 2)   # back to NCHW


# --------------------------- init + pure-JAX reference ------------------------

def init_preact_params(key, channels):
    ks = jax.random.split(key, 8)
    bound = 1.0 / (channels * 9) ** 0.5

    def conv_w(k):
        return jax.random.uniform(k, (channels, channels, 3, 3), jnp.float32,
                                  -bound, bound)

    def conv_b(k):
        return jax.random.uniform(k, (channels,), jnp.float32, -bound, bound)

    return {
        "conv1_w": conv_w(ks[0]), "conv1_b": conv_b(ks[1]),
        "conv2_w": conv_w(ks[2]), "conv2_b": conv_b(ks[3]),
        "bn1_gamma": 1.0 + 0.1 * jax.random.normal(ks[4], (channels,), jnp.float32),
        "bn1_beta": 0.1 * jax.random.normal(ks[5], (channels,), jnp.float32),
        "bn2_gamma": 1.0 + 0.1 * jax.random.normal(ks[6], (channels,), jnp.float32),
        "bn2_beta": 0.1 * jax.random.normal(ks[7], (channels,), jnp.float32),
    }


def _ref_forward(params, x):
    def conv(z, w, b):
        y = jax.lax.conv_general_dilated(
            z, w, window_strides=(1, 1), padding=[(1, 1), (1, 1)],
            dimension_numbers=("NCHW", "OIHW", "NCHW"))
        return y + b[None, :, None, None]

    def bn(z, g, bt):
        m = jnp.mean(z, axis=(0, 2, 3), keepdims=True)
        v = jnp.mean((z - m) ** 2, axis=(0, 2, 3), keepdims=True)
        return (z - m) / jnp.sqrt(v + _BN_EPS) * g[None, :, None, None] \
            + bt[None, :, None, None]

    y = jax.nn.relu(bn(x, params["bn1_gamma"], params["bn1_beta"]))
    y = conv(y, params["conv1_w"], params["conv1_b"])
    y = jax.nn.relu(bn(y, params["bn2_gamma"], params["bn2_beta"]))
    y = conv(y, params["conv2_w"], params["conv2_b"])
    return y + x


# ------------------------------------ main ------------------------------------

if __name__ == "__main__":
    N, C, H, W = 2, 8, 16, 16        # W*C = 128 -> lane-dense kernel layout
    key = jax.random.PRNGKey(0)
    kx, kp = jax.random.split(key)
    x = jax.random.normal(kx, (N, C, H, W), jnp.float32)   # NCHW, PyTorch-style
    params = init_preact_params(kp, C)
    ref = _ref_forward(params, x)
    assert ref.shape == (N, C, H, W)

    # 1) f32 matmul operands: strict numerical check against the reference.
    packed_f32 = pack_preact_params(params, width=W, matmul_dtype=jnp.float32)
    out_f32 = jax.block_until_ready(preact_block_forward(packed_f32, x))
    assert out_f32.shape == ref.shape
    assert bool(jnp.all(jnp.isfinite(out_f32)))
    assert bool(jnp.allclose(out_f32, ref, atol=2e-4, rtol=2e-4)), \
        float(jnp.max(jnp.abs(out_f32 - ref)))

    # 2) bf16 matmul operands (production default: full-rate MXU, half the
    #    constant DMA); f32 accumulation keeps the error at the bf16 level.
    packed_bf16 = pack_preact_params(params, width=W, matmul_dtype=jnp.bfloat16)
    out_bf16 = jax.block_until_ready(preact_block_forward(packed_bf16, x))
    assert out_bf16.shape == ref.shape
    assert bool(jnp.all(jnp.isfinite(out_bf16)))
    assert bool(jnp.allclose(out_bf16, ref, atol=3e-2, rtol=3e-2)), \
        float(jnp.max(jnp.abs(out_bf16 - ref)))

    print("KERNEL_OK")
</pallas_src>

<mosaic_0001>
module attributes {stable_mosaic.version = 11 : i64} {
  func.func @_preact_block_kernel(%arg0: i32, %arg1: memref<32x128xf32, #tpu.memory_space<vmem>>, %arg2: memref<384x128xf32, #tpu.memory_space<vmem>>, %arg3: memref<384x128xf32, #tpu.memory_space<vmem>>, %arg4: memref<1x128xf32, #tpu.memory_space<vmem>>, %arg5: memref<1x128xf32, #tpu.memory_space<vmem>>, %arg6: memref<1x128xf32, #tpu.memory_space<vmem>>, %arg7: memref<1x128xf32, #tpu.memory_space<vmem>>, %arg8: memref<1x128xf32, #tpu.memory_space<vmem>>, %arg9: memref<32x128xf32, #tpu.memory_space<vmem>>) attributes {dimension_semantics = [#tpu.dimension_semantics<arbitrary>], iteration_bounds = array<i64: 1>, scalar_prefetch = 0 : i64, scratch_operands = 0 : i64, tpu.core_type = #tpu.core_type<tc>, window_params = [{pipeline_mode = #tpu.pipeline_mode<synchronous>, transform_indices = @transform_0, window_bounds = array<i64: 32, 128>}, {pipeline_mode = #tpu.pipeline_mode<synchronous>, transform_indices = @transform_1, window_bounds = array<i64: 384, 128>}, {pipeline_mode = #tpu.pipeline_mode<synchronous>, transform_indices = @transform_2, window_bounds = array<i64: 384, 128>}, {pipeline_mode = #tpu.pipeline_mode<synchronous>, transform_indices = @transform_3, window_bounds = array<i64: 1, 128>}, {pipeline_mode = #tpu.pipeline_mode<synchronous>, transform_indices = @transform_4, window_bounds = array<i64: 1, 128>}, {pipeline_mode = #tpu.pipeline_mode<synchronous>, transform_indices = @transform_5, window_bounds = array<i64: 1, 128>}, {pipeline_mode = #tpu.pipeline_mode<synchronous>, transform_indices = @transform_6, window_bounds = array<i64: 1, 128>}, {pipeline_mode = #tpu.pipeline_mode<synchronous>, transform_indices = @transform_7, window_bounds = array<i64: 1, 128>}, {pipeline_mode = #tpu.pipeline_mode<synchronous>, transform_indices = @transform_8, window_bounds = array<i64: 32, 128>}]} {
    %0 = tpu.iota {dimensions = array<i32: 0>} : vector<32x128xi32>
    %c16_i32 = arith.constant 16 : i32
    %c0_i32 = arith.constant 0 : i32
    %1 = arith.cmpi eq, %c16_i32, %c0_i32 : i32
    %c1_i32 = arith.constant 1 : i32
    %2 = arith.select %1, %c1_i32, %c16_i32 : i32
    %3 = vector.broadcast %2 : i32 to vector<32x128xi32>
    %4 = arith.remsi %0, %3 : vector<32x128xi32>
    %c0_i32_0 = arith.constant 0 : i32
    %5 = vector.broadcast %c0_i32_0 : i32 to vector<32x128xi32>
    %6 = arith.cmpi ne, %4, %5 : vector<32x128xi32>
    %c0_i32_1 = arith.constant 0 : i32
    %7 = vector.broadcast %c0_i32_1 : i32 to vector<32x128xi32>
    %8 = arith.cmpi slt, %4, %7 : vector<32x128xi32>
    %c0_i32_2 = arith.constant 0 : i32
    %9 = arith.cmpi slt, %2, %c0_i32_2 : i32
    %10 = vector.broadcast %9 : i1 to vector<32x128xi1>
    %11 = vector.broadcast %10 : vector<32x128xi1> to vector<32x128xi1>
    %12 = arith.xori %8, %11 : vector<32x128xi1>
    %13 = arith.andi %12, %6 : vector<32x128xi1>
    %14 = vector.broadcast %2 : i32 to vector<32x128xi32>
    %15 = arith.addi %4, %14 : vector<32x128xi32>
    %16 = arith.select %13, %15, %4 : vector<32x128xi1>, vector<32x128xi32>
    %c0_i32_3 = arith.constant 0 : i32
    %17 = vector.broadcast %c0_i32_3 : i32 to vector<32x128xi32>
    %18 = arith.cmpi sgt, %16, %17 : vector<32x128xi32>
    %c15_i32 = arith.constant 15 : i32
    %19 = vector.broadcast %c15_i32 : i32 to vector<32x128xi32>
    %20 = arith.cmpi slt, %16, %19 : vector<32x128xi32>
    %c0 = arith.constant 0 : index
    %c0_4 = arith.constant 0 : index
    %21 = vector.load %arg1[%c0, %c0_4] : memref<32x128xf32, #tpu.memory_space<vmem>>, vector<32x128xf32>
    %c0_5 = arith.constant 0 : index
    %c0_6 = arith.constant 0 : index
    %22 = vector.load %arg4[%c0_5, %c0_6] : memref<1x128xf32, #tpu.memory_space<vmem>>, vector<1x128xf32>
    %c0_7 = arith.constant 0 : index
    %c0_8 = arith.constant 0 : index
    %23 = vector.load %arg5[%c0_7, %c0_8] : memref<1x128xf32, #tpu.memory_space<vmem>>, vector<1x128xf32>
    %cst = arith.constant dense<0.000000e+00> : vector<128xf32>
    %24 = vector.multi_reduction <add>, %21, %cst [0] : vector<32x128xf32> to vector<128xf32>
    %25 = vector.shape_cast %24 : vector<128xf32> to vector<1x128xf32>
    %26 = arith.mulf %21, %21 : vector<32x128xf32>
    %cst_9 = arith.constant dense<0.000000e+00> : vector<128xf32>
    %27 = vector.multi_reduction <add>, %26, %cst_9 [0] : vector<32x128xf32> to vector<128xf32>
    %28 = vector.shape_cast %27 : vector<128xf32> to vector<1x128xf32>
    %29 = tpu.concatenate %25, %28 in 0 : vector<1x128xf32>, vector<1x128xf32> -> vector<2x128xf32>
    %c8_i32 = arith.constant 8 : i32
    %30 = tpu.dynamic_rotate %29 by %c8_i32 dim 1 : vector<2x128xf32>, i32 -> vector<2x128xf32>
    %31 = arith.addf %29, %30 : vector<2x128xf32>
    %c16_i32_10 = arith.constant 16 : i32
    %32 = tpu.dynamic_rotate %31 by %c16_i32_10 dim 1 : vector<2x128xf32>, i32 -> vector<2x128xf32>
    %33 = arith.addf %31, %32 : vector<2x128xf32>
    %c32_i32 = arith.constant 32 : i32
    %34 = tpu.dynamic_rotate %33 by %c32_i32 dim 1 : vector<2x128xf32>, i32 -> vector<2x128xf32>
    %35 = arith.addf %33, %34 : vector<2x128xf32>
    %c64_i32 = arith.constant 64 : i32
    %36 = tpu.dynamic_rotate %35 by %c64_i32 dim 1 : vector<2x128xf32>, i32 -> vector<2x128xf32>
    %37 = arith.addf %35, %36 : vector<2x128xf32>
    %cst_11 = arith.constant 0.001953125 : f32
    %38 = vector.broadcast %cst_11 : f32 to vector<2x128xf32>
    %39 = arith.mulf %37, %38 : vector<2x128xf32>
    %40 = vector.extract_strided_slice %39 {offsets = [0, 0], sizes = [1, 128], strides = [1, 1]} : vector<2x128xf32> to vector<1x128xf32>
    %41 = vector.extract_strided_slice %39 {offsets = [1, 0], sizes = [1, 128], strides = [1, 1]} : vector<2x128xf32> to vector<1x128xf32>
    %42 = arith.mulf %40, %40 : vector<1x128xf32>
    %43 = arith.subf %41, %42 : vector<1x128xf32>
    %44 = vector.broadcast %40 : vector<1x128xf32> to vector<32x128xf32>
    %45 = arith.subf %21, %44 : vector<32x128xf32>
    %cst_12 = arith.constant 9.99999974E-6 : f32
    %46 = vector.broadcast %cst_12 : f32 to vector<1x128xf32>
    %47 = arith.addf %43, %46 : vector<1x128xf32>
    %48 = math.rsqrt %47 : vector<1x128xf32>
    %49 = vector.broadcast %48 : vector<1x128xf32> to vector<32x128xf32>
    %50 = arith.mulf %45, %49 : vector<32x128xf32>
    %51 = vector.broadcast %22 : vector<1x128xf32> to vector<32x128xf32>
    %52 = arith.mulf %50, %51 : vector<32x128xf32>
    %53 = vector.broadcast %23 : vector<1x128xf32> to vector<32x128xf32>
    %54 = arith.addf %52, %53 : vector<32x128xf32>
    %cst_13 = arith.constant 0.000000e+00 : f32
    %55 = vector.broadcast %cst_13 : f32 to vector<32x128xf32>
    %56 = arith.maximumf %54, %55 : vector<32x128xf32>
    %c1_i32_14 = arith.constant 1 : i32
    %57 = tpu.dynamic_rotate %56 by %c1_i32_14 dim 0 : vector<32x128xf32>, i32 -> vector<32x128xf32>
    %cst_15 = arith.constant 0.000000e+00 : f32
    %58 = vector.broadcast %cst_15 : f32 to vector<32x128xf32>
    %59 = arith.select %18, %57, %58 : vector<32x128xi1>, vector<32x128xf32>
    %c31_i32 = arith.constant 31 : i32
    %60 = tpu.dynamic_rotate %56 by %c31_i32 dim 0 : vector<32x128xf32>, i32 -> vector<32x128xf32>
    %cst_16 = arith.constant 0.000000e+00 : f32
    %61 = vector.broadcast %cst_16 : f32 to vector<32x128xf32>
    %62 = arith.select %20, %60, %61 : vector<32x128xi1>, vector<32x128xf32>
    %63 = tpu.concatenate %59, %56, %62 in 1 : vector<32x128xf32>, vector<32x128xf32>, vector<32x128xf32> -> vector<32x384xf32>
    %c0_17 = arith.constant 0 : index
    %c0_18 = arith.constant 0 : index
    %64 = vector.load %arg2[%c0_17, %c0_18] : memref<384x128xf32, #tpu.memory_space<vmem>>, vector<384x128xf32>
    %cst_19 = arith.constant dense<0.000000e+00> : vector<32x128xf32>
    %65 = tpu.matmul %63, %64, %cst_19 {dimension_numbers = #tpu.dot_dimension_numbers<[1], [0], [0], [1], [0, 0, 1, 1], [], []>} : vector<32x384xf32>, vector<384x128xf32>, vector<32x128xf32> -> vector<32x128xf32>
    %c0_20 = arith.constant 0 : index
    %c0_21 = arith.constant 0 : index
    %66 = vector.load %arg6[%c0_20, %c0_21] : memref<1x128xf32, #tpu.memory_space<vmem>>, vector<1x128xf32>
    %c0_22 = arith.constant 0 : index
    %c0_23 = arith.constant 0 : index
    %67 = vector.load %arg7[%c0_22, %c0_23] : memref<1x128xf32, #tpu.memory_space<vmem>>, vector<1x128xf32>
    %cst_24 = arith.constant dense<0.000000e+00> : vector<128xf32>
    %68 = vector.multi_reduction <add>, %65, %cst_24 [0] : vector<32x128xf32> to vector<128xf32>
    %69 = vector.shape_cast %68 : vector<128xf32> to vector<1x128xf32>
    %70 = arith.mulf %65, %65 : vector<32x128xf32>
    %cst_25 = arith.constant dense<0.000000e+00> : vector<128xf32>
    %71 = vector.multi_reduction <add>, %70, %cst_25 [0] : vector<32x128xf32> to vector<128xf32>
    %72 = vector.shape_cast %71 : vector<128xf32> to vector<1x128xf32>
    %73 = tpu.concatenate %69, %72 in 0 : vector<1x128xf32>, vector<1x128xf32> -> vector<2x128xf32>
    %c8_i32_26 = arith.constant 8 : i32
    %74 = tpu.dynamic_rotate %73 by %c8_i32_26 dim 1 : vector<2x128xf32>, i32 -> vector<2x128xf32>
    %75 = arith.addf %73, %74 : vector<2x128xf32>
    %c16_i32_27 = arith.constant 16 : i32
    %76 = tpu.dynamic_rotate %75 by %c16_i32_27 dim 1 : vector<2x128xf32>, i32 -> vector<2x128xf32>
    %77 = arith.addf %75, %76 : vector<2x128xf32>
    %c32_i32_28 = arith.constant 32 : i32
    %78 = tpu.dynamic_rotate %77 by %c32_i32_28 dim 1 : vector<2x128xf32>, i32 -> vector<2x128xf32>
    %79 = arith.addf %77, %78 : vector<2x128xf32>
    %c64_i32_29 = arith.constant 64 : i32
    %80 = tpu.dynamic_rotate %79 by %c64_i32_29 dim 1 : vector<2x128xf32>, i32 -> vector<2x128xf32>
    %81 = arith.addf %79, %80 : vector<2x128xf32>
    %cst_30 = arith.constant 0.001953125 : f32
    %82 = vector.broadcast %cst_30 : f32 to vector<2x128xf32>
    %83 = arith.mulf %81, %82 : vector<2x128xf32>
    %84 = vector.extract_strided_slice %83 {offsets = [0, 0], sizes = [1, 128], strides = [1, 1]} : vector<2x128xf32> to vector<1x128xf32>
    %85 = vector.extract_strided_slice %83 {offsets = [1, 0], sizes = [1, 128], strides = [1, 1]} : vector<2x128xf32> to vector<1x128xf32>
    %86 = arith.mulf %84, %84 : vector<1x128xf32>
    %87 = arith.subf %85, %86 : vector<1x128xf32>
    %88 = vector.broadcast %84 : vector<1x128xf32> to vector<32x128xf32>
    %89 = arith.subf %65, %88 : vector<32x128xf32>
    %cst_31 = arith.constant 9.99999974E-6 : f32
    %90 = vector.broadcast %cst_31 : f32 to vector<1x128xf32>
    %91 = arith.addf %87, %90 : vector<1x128xf32>
    %92 = math.rsqrt %91 : vector<1x128xf32>
    %93 = vector.broadcast %92 : vector<1x128xf32> to vector<32x128xf32>
    %94 = arith.mulf %89, %93 : vector<32x128xf32>
    %95 = vector.broadcast %66 : vector<1x128xf32> to vector<32x128xf32>
    %96 = arith.mulf %94, %95 : vector<32x128xf32>
    %97 = vector.broadcast %67 : vector<1x128xf32> to vector<32x128xf32>
    %98 = arith.addf %96, %97 : vector<32x128xf32>
    %cst_32 = arith.constant 0.000000e+00 : f32
    %99 = vector.broadcast %cst_32 : f32 to vector<32x128xf32>
    %100 = arith.maximumf %98, %99 : vector<32x128xf32>
    %c1_i32_33 = arith.constant 1 : i32
    %101 = tpu.dynamic_rotate %100 by %c1_i32_33 dim 0 : vector<32x128xf32>, i32 -> vector<32x128xf32>
    %cst_34 = arith.constant 0.000000e+00 : f32
    %102 = vector.broadcast %cst_34 : f32 to vector<32x128xf32>
    %103 = arith.select %18, %101, %102 : vector<32x128xi1>, vector<32x128xf32>
    %c31_i32_35 = arith.constant 31 : i32
    %104 = tpu.dynamic_rotate %100 by %c31_i32_35 dim 0 : vector<32x128xf32>, i32 -> vector<32x128xf32>
    %cst_36 = arith.constant 0.000000e+00 : f32
    %105 = vector.broadcast %cst_36 : f32 to vector<32x128xf32>
    %106 = arith.select %20, %104, %105 : vector<32x128xi1>, vector<32x128xf32>
    %107 = tpu.concatenate %103, %100, %106 in 1 : vector<32x128xf32>, vector<32x128xf32>, vector<32x128xf32> -> vector<32x384xf32>
    %c0_37 = arith.constant 0 : index
    %c0_38 = arith.constant 0 : index
    %108 = vector.load %arg3[%c0_37, %c0_38] : memref<384x128xf32, #tpu.memory_space<vmem>>, vector<384x128xf32>
    %cst_39 = arith.constant dense<0.000000e+00> : vector<32x128xf32>
    %109 = tpu.matmul %107, %108, %cst_39 {dimension_numbers = #tpu.dot_dimension_numbers<[1], [0], [0], [1], [0, 0, 1, 1], [], []>} : vector<32x384xf32>, vector<384x128xf32>, vector<32x128xf32> -> vector<32x128xf32>
    %c0_40 = arith.constant 0 : index
    %c0_41 = arith.constant 0 : index
    %110 = vector.load %arg8[%c0_40, %c0_41] : memref<1x128xf32, #tpu.memory_space<vmem>>, vector<1x128xf32>
    %111 = vector.broadcast %110 : vector<1x128xf32> to vector<32x128xf32>
    %112 = arith.addf %109, %111 : vector<32x128xf32>
    %c0_42 = arith.constant 0 : index
    %c0_43 = arith.constant 0 : index
    %113 = vector.load %arg1[%c0_42, %c0_43] : memref<32x128xf32, #tpu.memory_space<vmem>>, vector<32x128xf32>
    %114 = arith.addf %112, %113 : vector<32x128xf32>
    %c0_44 = arith.constant 0 : index
    %c0_45 = arith.constant 0 : index
    %115 = vector.load %arg9[%c0_44, %c0_45] : memref<32x128xf32, #tpu.memory_space<vmem>>, vector<32x128xf32>
    tpu.vector_store %arg9[%c0_44, %c0_45], %114 {strides = array<i32>} : memref<32x128xf32, #tpu.memory_space<vmem>>, vector<32x128xf32>,
    return
  }
  func.func @transform_0(%arg0: i32) -> (i32, i32) {
    %c0_i32 = arith.constant 0 : i32
    %c0_i32_0 = arith.constant 0 : i32
    %c0_i32_1 = arith.constant 0 : i32
    return %c0_i32, %c0_i32_0 : i32, i32
  }
  func.func @transform_1(%arg0: i32) -> (i32, i32) {
    %c0_i32 = arith.constant 0 : i32
    %c0_i32_0 = arith.constant 0 : i32
    %c0_i32_1 = arith.constant 0 : i32
    return %c0_i32, %c0_i32_0 : i32, i32
  }
  func.func @transform_2(%arg0: i32) -> (i32, i32) {
    %c0_i32 = arith.constant 0 : i32
    %c0_i32_0 = arith.constant 0 : i32
    %c0_i32_1 = arith.constant 0 : i32
    return %c0_i32, %c0_i32_0 : i32, i32
  }
  func.func @transform_3(%arg0: i32) -> (i32, i32) {
    %c0_i32 = arith.constant 0 : i32
    %c0_i32_0 = arith.constant 0 : i32
    %c0_i32_1 = arith.constant 0 : i32
    return %c0_i32, %c0_i32_0 : i32, i32
  }
  func.func @transform_4(%arg0: i32) -> (i32, i32) {
    %c0_i32 = arith.constant 0 : i32
    %c0_i32_0 = arith.constant 0 : i32
    %c0_i32_1 = arith.constant 0 : i32
    return %c0_i32, %c0_i32_0 : i32, i32
  }
  func.func @transform_5(%arg0: i32) -> (i32, i32) {
    %c0_i32 = arith.constant 0 : i32
    %c0_i32_0 = arith.constant 0 : i32
    %c0_i32_1 = arith.constant 0 : i32
    return %c0_i32, %c0_i32_0 : i32, i32
  }
  func.func @transform_6(%arg0: i32) -> (i32, i32) {
    %c0_i32 = arith.constant 0 : i32
    %c0_i32_0 = arith.constant 0 : i32
    %c0_i32_1 = arith.constant 0 : i32
    return %c0_i32, %c0_i32_0 : i32, i32
  }
  func.func @transform_7(%arg0: i32) -> (i32, i32) {
    %c0_i32 = arith.constant 0 : i32
    %c0_i32_0 = arith.constant 0 : i32
    %c0_i32_1 = arith.constant 0 : i32
    return %c0_i32, %c0_i32_0 : i32, i32
  }
  func.func @transform_8(%arg0: i32) -> (i32, i32) {
    %c0_i32 = arith.constant 0 : i32
    %c0_i32_0 = arith.constant 0 : i32
    %c0_i32_1 = arith.constant 0 : i32
    return %c0_i32, %c0_i32_0 : i32, i32
  }
}

</mosaic_0001>

<bundles_post_ra>
// kernel: preact_block_forward.1
= control target key start
LH: loop header
LB: loop body
LE: loop exit
PB: predicated region body
PF: predicated region fallthrough
CT: control target
= control target key end

     0   :  { %vm118_vm0 = vcmask 1040384   ;;  %s1124_s13 = smov 16   ;;  %s1125_s14 = smov 32   ;;  %s1651_s0 = inlined_call_operand.vmem [shape: f32[32,128], index: 0, kind: input, shape index: {}]   ;;  %s1652_s1 = inlined_call_operand.vmem [shape: f32[384,128], index: 1, kind: input, shape index: {}]   ;;  %s1653_s3 = inlined_call_operand.vmem [shape: f32[1,128], index: 3, kind: input, shape index: {}]   ;;  %s1654_s4 = inlined_call_operand.vmem [shape: f32[1,128], index: 4, kind: input, shape index: {}]   ;;  %s1655_s2 = inlined_call_operand.vmem [shape: f32[384,128], index: 2, kind: input, shape index: {}]   ;;  %s1656_s5 = inlined_call_operand.vmem [shape: f32[1,128], index: 5, kind: input, shape index: {}]   ;;  %s1657_s6 = inlined_call_operand.vmem [shape: f32[1,128], index: 6, kind: input, shape index: {}]   ;;  %s1658_s7 = inlined_call_operand.vmem [shape: f32[1,128], index: 7, kind: input, shape index: {}]   ;;  %s1659_s8 = inlined_call_operand.vmem [shape: f32[32,128], index: 8, kind: output, shape index: {}]  }
   0x1   :  { %v1175_v0 = vld [vmem:[%s1651_s0] sm:$0xff]  ;;  %v1180_v1 = vld [vmem:[%s1651_s0 + $0x8] sm:$0xff]  ;;  %v1185_v2 = vld [vmem:[%s1651_s0 + $0x10] sm:$0xff]  ;;  %s1126_s9 = smov 64  }
   0x2   :  { %v1190_v3 = vld [vmem:[%s1651_s0 + $0x18] sm:$0xff]  ;;  %v96_v4 = vadd.f32 %v1180_v1, %v1175_v0  ;;  %v105_v5 = vmul.f32 %v1175_v0, %v1175_v0  ;;  %v106_v6 = vmul.f32 %v1180_v1, %v1180_v1  ;;  %v107_v7 = vmul.f32 %v1185_v2, %v1185_v2  ;;  %s1123_s0 = smov 8   ;;  %v222_v31 = vld [vmem:[%s1652_s1 + $0x80] sm:$0xff]  ;;  %v223_v32 = vld [vmem:[%s1652_s1 + $0x88] sm:$0xff] }
   0x3   :  { %v108_v9 = vmul.f32 %v1190_v3, %v1190_v3  ;;  %v987_v33 = vpack.c.bf16 %v223_v32, %v222_v31  ;;  %v206_v34 = vld [vmem:[%s1652_s1] sm:$0xff]  ;;  %v207_v35 = vld [vmem:[%s1652_s1 + $0x8] sm:$0xff]  ;;  %v224_v40 = vld [vmem:[%s1652_s1 + $0x90] sm:$0xff] }
   0x4   :  { %v97_v8 = vadd.f32 %v96_v4, %v1185_v2  ;;  %v109_v10 = vadd.f32 %v106_v6, %v105_v5  ;;  %v238_v36 = vld [vmem:[%s1652_s1 + $0x100] sm:$0xff]  ;;  %v989_v37 = vpack.c.bf16 %v207_v35, %v206_v34  ;;  %v239_v38 = vld [vmem:[%s1652_s1 + $0x108] sm:$0xff]  ;;  %v225_v41 = vld [vmem:[%s1652_s1 + $0x98] sm:$0xff] }
   0x5   :  { %988 = vmatprep.subr.bf16.mxu0 %v987_v33  ;;  %v1019_v39 = vpack.c.bf16 %v239_v38, %v238_v36  ;;  %v991_v42 = vpack.c.bf16 %v225_v41, %v224_v40  ;;  %v208_v43 = vld [vmem:[%s1652_s1 + $0x10] sm:$0xff]  ;;  %v209_v44 = vld [vmem:[%s1652_s1 + $0x18] sm:$0xff]  ;;  %v226_v49 = vld [vmem:[%s1652_s1 + $0xa0] sm:$0xff] }
   0x6   :  { %v98_v11 = vadd.f32 %v97_v8, %v1190_v3  ;;  %v110_v12 = vadd.f32 %v109_v10, %v107_v7  ;;  %990 = vmatpush3.bf16.msra.mxu0 %v989_v37  ;;  %v240_v45 = vld [vmem:[%s1652_s1 + $0x110] sm:$0xff]  ;;  %v993_v46 = vpack.c.bf16 %v209_v44, %v208_v43  ;;  %v241_v47 = vld [vmem:[%s1652_s1 + $0x118] sm:$0xff]  ;;  %v227_v50 = vld [vmem:[%s1652_s1 + $0xa8] sm:$0xff] }
   0x7   :  { %1020 = vmatprep.subr.bf16.mxu1 %v1019_v39  ;;  %992 = vmatprep.subr.bf16.mxu0 %v991_v42  ;;  %v1023_v48 = vpack.c.bf16 %v241_v47, %v240_v45  ;;  %v995_v52 = vpack.c.bf16 %v227_v50, %v226_v49  ;;  %v210_v53 = vld [vmem:[%s1652_s1 + $0x20] sm:$0xff]  ;;  %v211_v54 = vld [vmem:[%s1652_s1 + $0x28] sm:$0xff]  ;;  %v228_v60 = vld [vmem:[%s1652_s1 + $0xb0] sm:$0xff]  ;;  %v29_v49 = vlaneseq }
   0x8   :  { %v99_v13 = vrot.slane %v98_v11, 4  ;;  %v111_v14 = vadd.f32 %v110_v12, %v108_v9  ;;  %1022 = vmatpush3.bf16.msra.mxu1 %v1019_v39  ;;  %v242_v55 = vld [vmem:[%s1652_s1 + $0x120] sm:$0xff]  ;;  %v997_v57 = vpack.c.bf16 %v211_v54, %v210_v53  ;;  %v243_v58 = vld [vmem:[%s1652_s1 + $0x128] sm:$0xff]  ;;  %v229_v61 = vld [vmem:[%s1652_s1 + $0xb8] sm:$0xff] }
   0x9   :  { %1024 = vmatprep.subr.bf16.mxu1 %v1023_v48  ;;  %v1027_v59 = vpack.c.bf16 %v243_v58, %v242_v55  ;;  %v999_v62 = vpack.c.bf16 %v229_v61, %v228_v60  ;;  %v212_v63 = vld [vmem:[%s1652_s1 + $0x30] sm:$0xff]  ;;  %v213_v4 = vld [vmem:[%s1652_s1 + $0x38] sm:$0xff]  ;;  %v230_v9 = vld [vmem:[%s1652_s1 + $0xc0] sm:$0xff] }
   0xa   :  { %v100_v15 = vadd.f32 %v99_v13, %v98_v11  ;;  %v112_v16 = vrot.slane %v111_v14, 4  ;;  %994 = vmatpush3.bf16.msra.mxu0 %v993_v46  ;;  %v244_v5 = vld [vmem:[%s1652_s1 + $0x130] sm:$0xff]  ;;  %v1001_v6 = vpack.c.bf16 %v213_v4, %v212_v63  ;;  %v245_v7 = vld [vmem:[%s1652_s1 + $0x138] sm:$0xff]  ;;  %v231_v10 = vld [vmem:[%s1652_s1 + $0xc8] sm:$0xff] }
   0xb   :  { %996 = vmatprep.subr.bf16.mxu0 %v995_v52  ;;  %v1031_v8 = vpack.c.bf16 %v245_v7, %v244_v5  ;;  %v1003_v11 = vpack.c.bf16 %v231_v10, %v230_v9  ;;  %v214_v12 = vld [vmem:[%s1652_s1 + $0x40] sm:$0xff]  ;;  %v215_v13 = vld [vmem:[%s1652_s1 + $0x48] sm:$0xff]  ;;  %v236_v36 = vld [vmem:[%s1652_s1 + $0xf0] sm:$0xff]  ;;  %v1357_v52 = vshrl.u32 %v29_v49, 7 }
   0xc   :  { %v101_v17 = vrot.slane %v100_v15, 2  ;;  %v113_v18 = vadd.f32 %v112_v16, %v111_v14  ;;  %1026 = vmatpush3.bf16.msra.mxu1 %v1023_v48  ;;  %v246_v14 = vld [vmem:[%s1652_s1 + $0x140] sm:$0xff]  ;;  %v247_v16 = vld [vmem:[%s1652_s1 + $0x148] sm:$0xff]  ;;  %v237_v37 = vld [vmem:[%s1652_s1 + $0xf8] sm:$0xff] }
   0xd   :  { %1028 = vmatprep.subr.bf16.mxu1 %v1027_v59  ;;  %v219_v31 = vld [vmem:[%s1652_s1 + $0x68] sm:$0xff]  ;;  %v250_v32 = vld [vmem:[%s1652_s1 + $0x160] sm:$0xff]  ;;  %v220_v38 = vld [vmem:[%s1652_s1 + $0x70] sm:$0xff]  ;;  %v1015_v39 = vpack.c.bf16 %v237_v37, %v236_v36  ;;  %v140_v54 = vsub.s32 0, %v1357_v52  ;;  %v31_v9 = vadd.s32 8, %v1357_v52  ;;  %vm184_vm2 = vcmp.lt.s32.totalorder %v1357_v52, 1 }
   0xe   :  { %v102_v19 = vadd.f32 %v101_v17, %v100_v15  ;;  %v114_v20 = vrot.slane %v113_v18, 2  ;;  %998 = vmatpush3.bf16.msra.mxu0 %v997_v57  ;;  %v1005_v15 = vpack.c.bf16 %v215_v13, %v214_v12  ;;  %v1035_v17 = vpack.c.bf16 %v247_v16, %v246_v14  ;;  %v251_v33 = vld [vmem:[%s1652_s1 + $0x168] sm:$0xff]  ;;  %v221_v40 = vld [vmem:[%s1652_s1 + $0x78] sm:$0xff]  ;;  %v252_v42 = vld [vmem:[%s1652_s1 + $0x170] sm:$0xff] }
   0xf   :  { %1000 = vmatprep.subr.bf16.mxu0 %v999_v62  ;;  %v1043_v35 = vpack.c.bf16 %v251_v33, %v250_v32  ;;  %v1017_v41 = vpack.c.bf16 %v221_v40, %v220_v38  ;;  %v253_v43 = vld [vmem:[%s1652_s1 + $0x178] sm:$0xff]  ;;  %v150_v57 = vsub.s32 1, %v1357_v52  ;;  %v770_v63 = vld [vmem:[%s1653_s3] ss:$0 sm:$0xff]  ;;  %v38_v14 = vand.u32 15, %v1357_v52 }
  0x10   :  { %v103_v21 = vrot.slane %v102_v19, 1  ;;  %v115_v22 = vadd.f32 %v114_v20, %v113_v18  ;;  %1030 = vmatpush3.bf16.msra.mxu1 %v1027_v59  ;;  %v232_v18 = vld [vmem:[%s1652_s1 + $0xd0] sm:$0xff]  ;;  %v1047_v44 = vpack.c.bf16 %v253_v43, %v252_v42  ;;  %vm197_vm3 = vcmp.lt.s32.totalorder %v1357_v52, 7 }
  0x11   :  { %1032 = vmatprep.subr.bf16.mxu1 %v1031_v8  ;;  %vm1378_vm1 = vcmp.gt.s32.totalorder %v38_v14, 0 }
  0x12   :  { %v104_v23 = vadd.f32 %v103_v21, %v102_v19  ;;  %v116_v24 = vrot.slane %v115_v22, 1  ;;  %1002 = vmatpush3.bf16.msra.mxu0 %v1001_v6  ;;  %v233_v19 = vld [vmem:[%s1652_s1 + $0xd8] sm:$0xff]  ;;  %v216_v21 = vld [vmem:[%s1652_s1 + $0x50] sm:$0xff] }
  0x13   :  { %1004 = vmatprep.subr.bf16.mxu0 %v1003_v11  ;;  %v1007_v20 = vpack.c.bf16 %v233_v19, %v232_v18  ;;  %v45_v19 = vand.u32 15, %v31_v9 }
  0x14   :  { %v117_v25 = vadd.f32 %v116_v24, %v115_v22  ;;  %1034 = vmatpush3.bf16.msra.mxu1 %v1031_v8  ;;  %v217_v22 = vld [vmem:[%s1652_s1 + $0x58] sm:$0xff]  ;;  %v771_v8 = vld [vmem:[%s1654_s4] ss:$0 sm:$0xff] }
  0x15   :  { %1036 = vmatprep.subr.bf16.mxu1 %v1035_v17  ;;  %v1009_v24 = vpack.c.bf16 %v217_v22, %v216_v21  ;;  %vm1385_vm4 = vcmp.lt.s32.totalorder %v45_v19, 15 }
  0x16   :  { %v119_v26 = vsel %vm118_vm0, %v104_v23, %v117_v25  ;;  %1006 = vmatpush3.bf16.msra.mxu0 %v1005_v15  ;;  %v248_v23 = vld [vmem:[%s1652_s1 + $0x150] sm:$0xff]  ;;  %v249_v25 = vld [vmem:[%s1652_s1 + $0x158] sm:$0xff] }
  0x17   :  { %120 = vrot.lane.b32.xlu0 %v119_v26, %s1123_s0  ;;  %1008 = vmatprep.subr.bf16.mxu0 %v1007_v20  ;;  %v33_v20 = vadd.s32 24, %v1357_v52 }
  0x18   :  { %1038 = vmatpush3.bf16.msra.mxu1 %v1035_v17 }
  0x1a   :  { %1010 = vmatpush3.bf16.msra.mxu0 %v1009_v24 }
  0x89   :  { %v121_v27 = vpop.permute.xlu0 %120 }
  0x8a   :  { %v122_v28 = vadd.f32 %v121_v27, %v119_v26  ;;  %v1039_v26 = vpack.c.bf16 %v249_v25, %v248_v23  ;;  %v234_v27 = vld [vmem:[%s1652_s1 + $0xe0] sm:$0xff] }
  0x8c   :  { %123 = vrot.lane.b32.xlu0 %v122_v28, %s1124_s13  ;;  %1040 = vmatprep.subr.bf16.mxu1 %v1039_v26 }
  0x8d   :  { %1042 = vmatpush3.bf16.msra.mxu1 %v1039_v26  ;;  %v32_v26 = vadd.s32 16, %v1357_v52 }
  0x8e   :  { %1044 = vmatprep.subr.bf16.mxu1 %v1043_v35 }
  0x8f   :  { %v52_v40 = vand.u32 15, %v32_v26 }
  0x91   :  { %1046 = vmatpush3.bf16.msra.mxu1 %v1043_v35  ;;  %vm1411_vm6 = vcmp.gt.s32.totalorder %v52_v40, 0  ;;  %v549_v40 = vld [vmem:[%s1655_s2 + $0x80] sm:$0xff] }
  0x92   :  { %1048 = vmatprep.subr.bf16.mxu1 %v1047_v44 }
  0x95   :  { %1050 = vmatpush3.bf16.msra.mxu1 %v1047_v44 }
  0xfe   :  { %v124_v29 = vpop.permute.xlu0 %123 }
  0xff   :  { %v125_v30 = vadd.f32 %v124_v29, %v122_v28  ;;  %v235_v28 = vld [vmem:[%s1652_s1 + $0xe8] sm:$0xff]  ;;  %v218_v29 = vld [vmem:[%s1652_s1 + $0x60] sm:$0xff] }
 0x100   :  { %v1013_v34 = vpack.c.bf16 %v219_v31, %v218_v29 }
 0x101   :  { %126 = vrot.lane.b32.xlu1 %v125_v30, %s1125_s14 }
 0x173   :  { %v127_v51 = vpop.permute.xlu1 %126 }
 0x174   :  { %v1259_v56 = vadd.f32 %v127_v51, %v125_v30  ;;  %v1011_v30 = vpack.c.bf16 %v235_v28, %v234_v27 }
 0x176   :  { %129 = vrot.lane.b32.xlu1 %v1259_v56, %s1126_s9  ;;  %1012 = vmatprep.subr.bf16.mxu0 %v1011_v30 }
 0x177   :  { %1014 = vmatpush3.bf16.msra.mxu0 %v1013_v34  ;;  %v59_v34 = vand.u32 15, %v33_v20 }
 0x178   :  { %1016 = vmatprep.subr.bf16.mxu0 %v1015_v39 }
 0x179   :  { %vm1401_vm5 = vcmp.lt.s32.totalorder %v59_v34, 15 }
 0x17b   :  { %1018 = vmatpush3.bf16.msra.mxu0 %v1017_v41 }
 0x1e8   :  { %v130_v45 = vpop.permute.xlu1 %129 }
 0x1e9   :  { %v131_v46 = vadd.f32 %v130_v45, %v1259_v56 }
 0x1eb   :  { %v132_v47 = vmul.f32 0.001953125, %v131_v46 }
 0x1ed   :  { %v133_v48 = vmul.f32 %v132_v47, %v132_v47  ;;  %v141_v55 = vrot.slane %v132_v47, %v140_v54 }
 0x1ef   :  { %v135_v50 = vrot.slane %v133_v48, 7  ;;  %v143_v59 = vsub.f32 %v1180_v1, %v141_v55  ;;  %v144_v56 = vsub.f32 %v1185_v2, %v141_v55  ;;  %v145_v60 = vsub.f32 %v1190_v3, %v141_v55 }
 0x1f0   :  { %v142_v62 = vsub.f32 %v1175_v0, %v141_v55 }
 0x1f1   :  { %v137_v51 = vsub.f32 %v132_v47, %v135_v50 }
 0x1f3   :  { %v146_v53 = vadd.f32 1e-05, %v137_v51 }
 0x1f5   :  { %1119 = vrsqrt.f32 %v146_v53 }
 0x1ff   :  { %v1120_v58 = vpop.eup %1119 }
 0x200   :  { %v151_v61 = vrot.slane %v1120_v58, %v150_v57 }
 0x202   :  { %v154_v4 = vmul.f32 %v151_v61, %v144_v56  ;;  %v155_v5 = vmul.f32 %v151_v61, %v145_v60  ;;  %v152_v6 = vmul.f32 %v151_v61, %v142_v62  ;;  %v153_v7 = vmul.f32 %v151_v61, %v143_v59 }
 0x204   :  { %v162_v10 = vmul.f32 %v770_v63, %v152_v6  ;;  %v164_v11 = vmul.f32 %v770_v63, %v154_v4  ;;  %v165_v12 = vmul.f32 %v770_v63, %v155_v5  ;;  %v163_v13 = vmul.f32 %v770_v63, %v153_v7 }
 0x206   :  { %v172_v15 = vadd.f32 %v771_v8, %v162_v10  ;;  %v174_v16 = vadd.f32 %v771_v8, %v164_v11  ;;  %v175_v17 = vadd.f32 %v771_v8, %v165_v12  ;;  %v173_v18 = vadd.f32 %v771_v8, %v163_v13 }
 0x208   :  { %v176_v21 = vmax.f32 %v172_v15, 0.0  ;;  %v179_v22 = vmax.f32 %v175_v17, 0.0  ;;  %v177_v23 = vmax.f32 %v173_v18, 0.0  ;;  %v178_v24 = vmax.f32 %v174_v16, 0.0 }
 0x20a   :  { %318 = vmatprep.mubr.f32.mxu0 %v176_v21  ;;  %v180_v27 = vrot.slane %v176_v21, 7  ;;  %v183_v28 = vrot.slane %v179_v22, 7  ;;  %v193_v29 = vrot.slane %v176_v21, 1  ;;  %v194_v30 = vrot.slane %v177_v23, 1 }
 0x20b   :  { %v195_v32 = vrot.slane %v178_v24, 1  ;;  %v196_v33 = vrot.slane %v179_v22, 1  ;;  %v181_v37 = vrot.slane %v177_v23, 7  ;;  %v182_v43 = vrot.slane %v178_v24, 7 }
 0x20c   :  { %v188_v35 = vsel %vm184_vm2, %v183_v28, %v180_v27  ;;  %v200_v36 = vsel %vm197_vm3, %v193_v29, %v194_v30 }
 0x20d   :  { %772 = vmatmul.mubr.msk.f32.vlgmr.msra.gmra.mrb[0].mxu0 %vm1378_vm1, %v188_v35  ;;  %943 = vmatprep.mubr.f32.mxu1 %v200_v36  ;;  %v199_v38 = vsel %vm197_vm3, %v194_v30, %v195_v32  ;;  %v198_v39 = vsel %vm197_vm3, %v195_v32, %v196_v33  ;;  %v187_v42 = vsel %vm184_vm2, %v180_v27, %v181_v37 }
 0x20e   :  { %323 = vmatprep.mubr.f32.mxu0 %v177_v23  ;;  %944 = vmatmul.mubr.msk.f32.vlgmr.msra.gmra.mrb[0].mxu1 %vm1385_vm4, %v199_v38  ;;  %v201_v44 = vsel %vm197_vm3, %v196_v33, %v193_v29  ;;  %v186_v46 = vsel %vm184_vm2, %v181_v37, %v182_v43  ;;  %v185_v47 = vsel %vm184_vm2, %v182_v43, %v183_v28 }
 0x20f   :  { %946 = vmatprep.mubr.f32.mxu1 %v198_v39 }
 0x211   :  { %324 = vmatmul.mubr.f32.gmra.mrb[2].mxu0 %v187_v42  ;;  %v550_v42 = vld [vmem:[%s1655_s2 + $0x88] sm:$0xff] }
 0x212   :  { %328 = vmatprep.mubr.f32.mxu0 %v178_v24  ;;  %947 = vmatmul.mubr.msk.f32.gmra.mrb[2].mxu1 %vm1401_vm5, %v201_v44  ;;  %v1051_v43 = vpack.c.bf16 %v550_v42, %v549_v40  ;;  %v533_v44 = vld [vmem:[%s1655_s2] sm:$0xff]  ;;  %v543_v42 = vld [vmem:[%s1655_s2 + $0x50] sm:$0xff] }
 0x214   :  { %1052 = vmatprep.subr.bf16.mxu0 %v1051_v43  ;;  %v544_v43 = vld [vmem:[%s1655_s2 + $0x58] sm:$0xff] }
 0x215   :  { %773 = vmatmul.mubr.msk.f32.gmra.mrb[4].mxu0 %vm1411_vm6, %v186_v46  ;;  %v534_v46 = vld [vmem:[%s1655_s2 + $0x8] sm:$0xff] }
 0x216   :  { %333 = vmatprep.mubr.f32.mxu0 %v179_v22 }
 0x219   :  { %334 = vmatmul.mubr.f32.gmra.mrb[6].mxu0 %v185_v47  ;;  %v565_v47 = vld [vmem:[%s1655_s2 + $0x100] sm:$0xff] }
 0x2e0   :  { %v815_v48 = vpop.f32.mrb[0].mxu0 }
 0x2e1   :  { %v816_v49 = vpop.f32.mrb[1].mxu0  ;;  %v945_v50 = vpop.f32.mrb[0].mxu1 }
 0x2e2   :  { %v817_v51 = vadd.f32 %v816_v49, %v815_v48  ;;  %v405_v53 = vpop.f32.mrb[1].mxu1  ;;  %v1053_v48 = vpack.c.bf16 %v534_v46, %v533_v44  ;;  %v566_v49 = vld [vmem:[%s1655_s2 + $0x108] sm:$0xff]  ;;  %v575_v44 = vld [vmem:[%s1655_s2 + $0x150] sm:$0xff]  ;;  %v1073_v46 = vpack.c.bf16 %v544_v43, %v543_v42 }
 0x2e4   :  { %v1421_v55 = vadd.f32 %v817_v51, %v405_v53  ;;  %v818_v58 = vpop.f32.mrb[2].mxu0  ;;  %1054 = vmatpush3.bf16.msra.mxu0 %v1053_v48  ;;  %v551_v51 = vld [vmem:[%s1655_s2 + $0x90] sm:$0xff]  ;;  %v552_v53 = vld [vmem:[%s1655_s2 + $0x98] sm:$0xff]  ;;  %v561_v48 = vld [vmem:[%s1655_s2 + $0xe0] sm:$0xff] }
 0x2e5   :  { %v819_v59 = vpop.f32.mrb[3].mxu0  ;;  %v948_v56 = vpop.f32.mrb[2].mxu1 }
 0x2e6   :  { %v820_v60 = vadd.f32 %v819_v59, %v818_v58  ;;  %v415_v61 = vpop.f32.mrb[3].mxu1  ;;  %v435_v10 = vmul.f32 %v1421_v55, %v1421_v55  ;;  %v1055_v58 = vpack.c.bf16 %v552_v53, %v551_v51  ;;  %v535_v59 = vld [vmem:[%s1655_s2 + $0x10] sm:$0xff]  ;;  %v545_v53 = vld [vmem:[%s1655_s2 + $0x60] sm:$0xff] }
 0x2e8   :  { %v1423_v62 = vadd.f32 %v945_v50, %v820_v60  ;;  %v821_v63 = vpop.f32.mrb[4].mxu0  ;;  %v1083_v50 = vpack.c.bf16 %v566_v49, %v565_v47  ;;  %v567_v60 = vld [vmem:[%s1655_s2 + $0x110] sm:$0xff]  ;;  %1056 = vmatprep.subr.bf16.mxu0 %v1055_v58  ;;  %v576_v47 = vld [vmem:[%s1655_s2 + $0x158] sm:$0xff]  ;;  %v562_v49 = vld [vmem:[%s1655_s2 + $0xe8] sm:$0xff] }
 0x2e9   :  { %v822_v4 = vpop.f32.mrb[5].mxu0  ;;  %v1075_v51 = vpack.c.bf16 %v562_v49, %v561_v48  ;;  %v546_v58 = vld [vmem:[%s1655_s2 + $0x68] sm:$0xff] }
 0x2ea   :  { %v823_v5 = vadd.f32 %v822_v4, %v821_v63  ;;  %v436_v6 = vmul.f32 %v1423_v62, %v1423_v62  ;;  %v426_v11 = vadd.f32 %v1423_v62, %v1421_v55  ;;  %1084 = vmatprep.subr.bf16.mxu1 %v1083_v50  ;;  %v568_v63 = vld [vmem:[%s1655_s2 + $0x118] sm:$0xff] }
 0x2eb   :  { %1086 = vmatpush3.bf16.msra.mxu1 %v1083_v50  ;;  %v1103_v50 = vpack.c.bf16 %v576_v47, %v575_v44 }
 0x2ec   :  { %v1427_v7 = vadd.f32 %v823_v5, %v415_v61  ;;  %v824_v8 = vpop.f32.mrb[6].mxu0  ;;  %v439_v14 = vadd.f32 %v436_v6, %v435_v10  ;;  %v1087_v5 = vpack.c.bf16 %v568_v63, %v567_v60  ;;  %v578_v60 = vld [vmem:[%s1655_s2 + $0x168] sm:$0xff]  ;;  %v564_v63 = vld [vmem:[%s1655_s2 + $0xf8] sm:$0xff] }
 0x2ed   :  { %v825_v9 = vpop.f32.mrb[7].mxu0 }
 0x2ee   :  { %v437_v12 = vmul.f32 %v1427_v7, %v1427_v7  ;;  %v826_v13 = vadd.f32 %v825_v9, %v824_v8  ;;  %v427_v15 = vadd.f32 %v426_v11, %v1427_v7  ;;  %v553_v8 = vld [vmem:[%s1655_s2 + $0xa0] sm:$0xff]  ;;  %v554_v9 = vld [vmem:[%s1655_s2 + $0xa8] sm:$0xff]  ;;  %1088 = vmatprep.subr.bf16.mxu1 %v1087_v5 }
 0x2ef   :  { %v1059_v10 = vpack.c.bf16 %v554_v9, %v553_v8  ;;  %v537_v11 = vld [vmem:[%s1655_s2 + $0x20] sm:$0xff]  ;;  %1090 = vmatpush3.bf16.msra.mxu1 %v1087_v5  ;;  %v547_v8 = vld [vmem:[%s1655_s2 + $0x70] sm:$0xff]  ;;  %v548_v9 = vld [vmem:[%s1655_s2 + $0x78] sm:$0xff] }
 0x2f0   :  { %v1436_v16 = vadd.f32 %v948_v56, %v826_v13  ;;  %v440_v17 = vadd.f32 %v439_v14, %v437_v12  ;;  %v536_v56 = vld [vmem:[%s1655_s2 + $0x18] sm:$0xff]  ;;  %v538_v12 = vld [vmem:[%s1655_s2 + $0x28] sm:$0xff]  ;;  %v569_v13 = vld [vmem:[%s1655_s2 + $0x120] sm:$0xff] }
 0x2f1   :  { %v1057_v61 = vpack.c.bf16 %v536_v56, %v535_v59  ;;  %v1061_v14 = vpack.c.bf16 %v538_v12, %v537_v11  ;;  %v577_v59 = vld [vmem:[%s1655_s2 + $0x160] sm:$0xff]  ;;  %v1077_v56 = vpack.c.bf16 %v546_v58, %v545_v53  ;;  %v579_v11 = vld [vmem:[%s1655_s2 + $0x170] sm:$0xff]  ;;  %v580_v12 = vld [vmem:[%s1655_s2 + $0x178] sm:$0xff] }
 0x2f2   :  { %v428_v18 = vadd.f32 %v427_v15, %v1436_v16  ;;  %v438_v19 = vmul.f32 %v1436_v16, %v1436_v16  ;;  %v570_v15 = vld [vmem:[%s1655_s2 + $0x128] sm:$0xff] }
 0x2f3   :  { %1058 = vmatpush3.bf16.msra.mxu0 %v1057_v61  ;;  %v563_v61 = vld [vmem:[%s1655_s2 + $0xf0] sm:$0xff] }
 0x2f4   :  { %v429_v20 = vrot.slane %v428_v18, 4  ;;  %v441_v21 = vadd.f32 %v440_v17, %v438_v19  ;;  %1060 = vmatprep.subr.bf16.mxu0 %v1059_v10  ;;  %v1091_v17 = vpack.c.bf16 %v570_v15, %v569_v13  ;;  %v556_v19 = vld [vmem:[%s1655_s2 + $0xb8] sm:$0xff]  ;;  %v1079_v5 = vpack.c.bf16 %v564_v63, %v563_v61 }
 0x2f5   :  { %v1081_v10 = vpack.c.bf16 %v548_v9, %v547_v8  ;;  %v1111_v13 = vpack.c.bf16 %v580_v12, %v579_v11  ;;  %v778_v8 = vld [vmem:[%s1658_s7] ss:$0 sm:$0xff] }
 0x2f6   :  { %v430_v22 = vadd.f32 %v429_v20, %v428_v18  ;;  %v442_v23 = vrot.slane %v441_v21, 4  ;;  %v555_v18 = vld [vmem:[%s1655_s2 + $0xb0] sm:$0xff]  ;;  %1092 = vmatprep.subr.bf16.mxu1 %v1091_v17 }
 0x2f7   :  { %1062 = vmatpush3.bf16.msra.mxu0 %v1061_v14  ;;  %v1063_v20 = vpack.c.bf16 %v556_v19, %v555_v18  ;;  %1094 = vmatpush3.bf16.msra.mxu1 %v1091_v17 }
 0x2f8   :  { %v431_v24 = vrot.slane %v430_v22, 2  ;;  %v443_v26 = vadd.f32 %v442_v23, %v441_v21  ;;  %v539_v21 = vld [vmem:[%s1655_s2 + $0x30] sm:$0xff] }
 0x2f9   :  { %v571_v23 = vld [vmem:[%s1655_s2 + $0x130] sm:$0xff]  ;;  %1064 = vmatprep.subr.bf16.mxu0 %v1063_v20 }
 0x2fa   :  { %v432_v27 = vadd.f32 %v431_v24, %v430_v22  ;;  %v444_v28 = vrot.slane %v443_v26, 2  ;;  %v540_v22 = vld [vmem:[%s1655_s2 + $0x38] sm:$0xff] }
 0x2fb   :  { %v1065_v24 = vpack.c.bf16 %v540_v22, %v539_v21 }
 0x2fc   :  { %v433_v29 = vrot.slane %v432_v27, 1  ;;  %v445_v30 = vadd.f32 %v444_v28, %v443_v26  ;;  %v572_v26 = vld [vmem:[%s1655_s2 + $0x138] sm:$0xff]  ;;  %v557_v28 = vld [vmem:[%s1655_s2 + $0xc0] sm:$0xff] }
 0x2fd   :  { %1066 = vmatpush3.bf16.msra.mxu0 %v1065_v24 }
 0x2fe   :  { %v446_v32 = vrot.slane %v445_v30, 1  ;;  %v434_v33 = vadd.f32 %v433_v29, %v432_v27  ;;  %v1095_v27 = vpack.c.bf16 %v572_v26, %v571_v23  ;;  %v558_v29 = vld [vmem:[%s1655_s2 + $0xc8] sm:$0xff] }
 0x300   :  { %v447_v34 = vadd.f32 %v446_v32, %v445_v30  ;;  %1096 = vmatprep.subr.bf16.mxu1 %v1095_v27  ;;  %v1067_v30 = vpack.c.bf16 %v558_v29, %v557_v28  ;;  %v541_v32 = vld [vmem:[%s1655_s2 + $0x40] sm:$0xff] }
 0x301   :  { %1098 = vmatpush3.bf16.msra.mxu1 %v1095_v27  ;;  %v776_v29 = vld [vmem:[%s1656_s5] ss:$0 sm:$0xff] }
 0x302   :  { %v448_v35 = vsel %vm118_vm0, %v434_v33, %v447_v34  ;;  %v542_v33 = vld [vmem:[%s1655_s2 + $0x48] sm:$0xff]  ;;  %v573_v34 = vld [vmem:[%s1655_s2 + $0x140] sm:$0xff]  ;;  %1068 = vmatprep.subr.bf16.mxu0 %v1067_v30 }
 0x303   :  { %449 = vrot.lane.b32.xlu0 %v448_v35, %s1123_s0 }
 0x375   :  { %v450_v36 = vpop.permute.xlu0 %449 }
 0x376   :  { %v451_v37 = vadd.f32 %v450_v36, %v448_v35  ;;  %v1069_v35 = vpack.c.bf16 %v542_v33, %v541_v32  ;;  %v574_v36 = vld [vmem:[%s1655_s2 + $0x148] sm:$0xff] }
 0x378   :  { %452 = vrot.lane.b32.xlu1 %v451_v37, %s1124_s13  ;;  %1070 = vmatpush3.bf16.msra.mxu0 %v1069_v35 }
 0x3ea   :  { %v453_v38 = vpop.permute.xlu1 %452 }
 0x3eb   :  { %v454_v39 = vadd.f32 %v453_v38, %v451_v37  ;;  %v1099_v37 = vpack.c.bf16 %v574_v36, %v573_v34  ;;  %v559_v38 = vld [vmem:[%s1655_s2 + $0xd0] sm:$0xff] }
 0x3ed   :  { %455 = vrot.lane.b32.xlu0 %v454_v39, %s1125_s14  ;;  %1100 = vmatprep.subr.bf16.mxu1 %v1099_v37 }
 0x3ee   :  { %1102 = vmatpush3.bf16.msra.mxu1 %v1099_v37 }
 0x3ef   :  { %1104 = vmatprep.subr.bf16.mxu1 %v1103_v50 }
 0x3f2   :  { %1106 = vmatpush3.bf16.msra.mxu1 %v1103_v50 }
 0x45f   :  { %v456_v4 = vpop.permute.xlu0 %455 }
 0x460   :  { %v1481_v6 = vadd.f32 %v456_v4, %v454_v39  ;;  %v560_v39 = vld [vmem:[%s1655_s2 + $0xd8] sm:$0xff]  ;;  %v1107_v4 = vpack.c.bf16 %v578_v60, %v577_v59 }
 0x461   :  { %v1071_v40 = vpack.c.bf16 %v560_v39, %v559_v38 }
 0x462   :  { %458 = vrot.lane.b32.xlu1 %v1481_v6, %s1126_s9  ;;  %1108 = vmatprep.subr.bf16.mxu1 %v1107_v4 }
 0x463   :  { %1072 = vmatprep.subr.bf16.mxu0 %v1071_v40  ;;  %1110 = vmatpush3.bf16.msra.mxu1 %v1107_v4 }
 0x464   :  { %1074 = vmatpush3.bf16.msra.mxu0 %v1073_v46  ;;  %1112 = vmatprep.subr.bf16.mxu1 %v1111_v13 }
 0x465   :  { %1076 = vmatprep.subr.bf16.mxu0 %v1075_v51 }
 0x467   :  { %1114 = vmatpush3.bf16.msra.mxu1 %v1111_v13 }
 0x468   :  { %1078 = vmatpush3.bf16.msra.mxu0 %v1077_v56 }
 0x469   :  { %1080 = vmatprep.subr.bf16.mxu0 %v1079_v5 }
 0x46c   :  { %1082 = vmatpush3.bf16.msra.mxu0 %v1081_v10 }
 0x4d4   :  { %v459_v14 = vpop.permute.xlu1 %458 }
 0x4d5   :  { %v460_v15 = vadd.f32 %v459_v14, %v1481_v6 }
 0x4d7   :  { %v461_v17 = vmul.f32 0.001953125, %v460_v15 }
 0x4d9   :  { %v462_v18 = vmul.f32 %v461_v17, %v461_v17  ;;  %v470_v22 = vrot.slane %v461_v17, %v140_v54 }
 0x4db   :  { %v464_v19 = vrot.slane %v462_v18, 7  ;;  %v472_v24 = vsub.f32 %v1423_v62, %v470_v22  ;;  %v473_v26 = vsub.f32 %v1427_v7, %v470_v22  ;;  %v474_v27 = vsub.f32 %v1436_v16, %v470_v22  ;;  %v777_v62 = vld [vmem:[%s1657_s6] ss:$0 sm:$0xff] }
 0x4dc   :  { %v471_v6 = vsub.f32 %v1421_v55, %v470_v22 }
 0x4dd   :  { %v466_v20 = vsub.f32 %v461_v17, %v464_v19 }
 0x4df   :  { %v475_v21 = vadd.f32 1e-05, %v466_v20 }
 0x4e1   :  { %1121 = vrsqrt.f32 %v475_v21 }
 0x4eb   :  { %v1122_v23 = vpop.eup %1121 }
 0x4ec   :  { %v480_v28 = vrot.slane %v1122_v23, %v150_v57 }
 0x4ee   :  { %v483_v30 = vmul.f32 %v480_v28, %v473_v26  ;;  %v484_v32 = vmul.f32 %v480_v28, %v474_v27  ;;  %v481_v33 = vmul.f32 %v480_v28, %v471_v6  ;;  %v482_v54 = vmul.f32 %v480_v28, %v472_v24 }
 0x4f0   :  { %v491_v7 = vmul.f32 %v776_v29, %v481_v33  ;;  %v493_v34 = vmul.f32 %v776_v29, %v483_v30  ;;  %v494_v16 = vmul.f32 %v776_v29, %v484_v32  ;;  %v492_v35 = vmul.f32 %v776_v29, %v482_v54 }
 0x4f2   :  { %v501_v36 = vadd.f32 %v777_v62, %v491_v7  ;;  %v503_v57 = vadd.f32 %v777_v62, %v493_v34  ;;  %v504_v37 = vadd.f32 %v777_v62, %v494_v16  ;;  %v502_v55 = vadd.f32 %v777_v62, %v492_v35 }
 0x4f4   :  { %v505_v38 = vmax.f32 %v501_v36, 0.0  ;;  %v507_v39 = vmax.f32 %v503_v57, 0.0  ;;  %v508_v40 = vmax.f32 %v504_v37, 0.0  ;;  %v506_v42 = vmax.f32 %v502_v55, 0.0 }
 0x4f6   :  { %v509_v43 = vrot.slane %v505_v38, 7  ;;  %652 = vmatprep.mubr.f32.mxu0 %v505_v38  ;;  %v512_v44 = vrot.slane %v508_v40, 7  ;;  %v521_v46 = vrot.slane %v505_v38, 1  ;;  %v522_v47 = vrot.slane %v506_v42, 1 }
 0x4f7   :  { %v523_v48 = vrot.slane %v507_v39, 1  ;;  %v524_v49 = vrot.slane %v508_v40, 1  ;;  %v510_v53 = vrot.slane %v506_v42, 7  ;;  %v511_v60 = vrot.slane %v507_v39, 7 }
 0x4f8   :  { %v516_v50 = vsel %vm184_vm2, %v512_v44, %v509_v43  ;;  %v527_v51 = vsel %vm197_vm3, %v521_v46, %v522_v47 }
 0x4f9   :  { %779 = vmatmul.mubr.msk.f32.vlgmr.msra.gmra.mrb[8].mxu0 %vm1378_vm1, %v516_v50  ;;  %981 = vmatprep.mubr.f32.mxu1 %v527_v51  ;;  %v526_v58 = vsel %vm197_vm3, %v522_v47, %v523_v48  ;;  %v525_v59 = vsel %vm197_vm3, %v523_v48, %v524_v49  ;;  %v515_v56 = vsel %vm184_vm2, %v509_v43, %v510_v53 }
 0x4fa   :  { %657 = vmatprep.mubr.f32.mxu0 %v506_v42  ;;  %982 = vmatmul.mubr.msk.f32.vlgmr.msra.gmra.mrb[4].mxu1 %vm1385_vm4, %v526_v58  ;;  %v528_v25 = vsel %vm197_vm3, %v524_v49, %v521_v46  ;;  %v514_v31 = vsel %vm184_vm2, %v510_v53, %v511_v60  ;;  %v513_v61 = vsel %vm184_vm2, %v511_v60, %v512_v44 }
 0x4fb   :  { %984 = vmatprep.mubr.f32.mxu1 %v525_v59 }
 0x4fd   :  { %658 = vmatmul.mubr.f32.gmra.mrb[10].mxu0 %v515_v56 }
 0x4fe   :  { %662 = vmatprep.mubr.f32.mxu0 %v507_v39  ;;  %985 = vmatmul.mubr.msk.f32.gmra.mrb[6].mxu1 %vm1401_vm5, %v528_v25 }
 0x501   :  { %780 = vmatmul.mubr.msk.f32.gmra.mrb[12].mxu0 %vm1411_vm6, %v514_v31 }
 0x502   :  { %667 = vmatprep.mubr.f32.mxu0 %v508_v40 }
 0x505   :  { %668 = vmatmul.mubr.f32.gmra.mrb[14].mxu0 %v513_v61 }
 0x5cc   :  { %v879_v63 = vpop.f32.mrb[8].mxu0 }
 0x5cd   :  { %v880_v4 = vpop.f32.mrb[9].mxu0  ;;  %v983_v5 = vpop.f32.mrb[4].mxu1 }
 0x5ce   :  { %v881_v41 = vadd.f32 %v880_v4, %v879_v63  ;;  %v739_v9 = vpop.f32.mrb[5].mxu1 }
 0x5d0   :  { %v655_v10 = vadd.f32 %v881_v41, %v778_v8  ;;  %v882_v11 = vpop.f32.mrb[10].mxu0 }
 0x5d1   :  { %v883_v12 = vpop.f32.mrb[11].mxu0  ;;  %v986_v13 = vpop.f32.mrb[6].mxu1 }
 0x5d2   :  { %v740_v45 = vadd.f32 %v739_v9, %v655_v10  ;;  %v884_v14 = vadd.f32 %v883_v12, %v882_v11  ;;  %v749_v15 = vpop.f32.mrb[7].mxu1 }
 0x5d4   :  { %v758_v52 = vadd.f32 %v740_v45, %v1175_v0  ;;  %v660_v17 = vadd.f32 %v884_v14, %v778_v8  ;;  %v885_v18 = vpop.f32.mrb[12].mxu0 }
 0x5d5   :  { %v886_v19 = vpop.f32.mrb[13].mxu0 }
 0x5d6   :  { %762 = vst [vmem:[%s1659_s8] sm:$0xff] %v758_v52  ;;  %v745_v20 = vadd.f32 %v983_v5, %v660_v17  ;;  %v887_v21 = vadd.f32 %v886_v19, %v885_v18 }
 0x5d8   :  { %v759_v22 = vadd.f32 %v745_v20, %v1180_v1  ;;  %v665_v23 = vadd.f32 %v887_v21, %v778_v8  ;;  %v888_v24 = vpop.f32.mrb[14].mxu0 }
 0x5d9   :  { %v889_v26 = vpop.f32.mrb[15].mxu0 }
 0x5da   :  { %763 = vst [vmem:[%s1659_s8 + $0x8] sm:$0xff] %v759_v22  ;;  %v750_v27 = vadd.f32 %v749_v15, %v665_v23  ;;  %v890_v0 = vadd.f32 %v889_v26, %v888_v24 }
 0x5dc   :  { %v760_v28 = vadd.f32 %v750_v27, %v1185_v2  ;;  %v670_v6 = vadd.f32 %v890_v0, %v778_v8 }
 0x5de   :  { %764 = vst [vmem:[%s1659_s8 + $0x10] sm:$0xff] %v760_v28  ;;  %v755_v29 = vadd.f32 %v986_v13, %v670_v6 }
 0x5e0   :  { %v761_v30 = vadd.f32 %v755_v29, %v1190_v3 }
 0x5e2   :  { %765 = vst [vmem:[%s1659_s8 + $0x18] sm:$0xff] %v761_v30 }

</bundles_post_ra>
